<compile_context>
chip_gen: v7x
topology: tpu7x:2x2x1
jax: 0.10.0
libtpu: 0.0.40
codegen_flags: <defaults>
</compile_context>

<pallas_src>
import jax
import jax.numpy as jnp
import numpy as np
from jax import lax
from jax.experimental import pallas as pl
from jax.experimental.pallas import tpu as pltpu

# Small shapes consistent with the module's forward pass.
B = 2            # batch
SEQ = 16         # seq_len
FEAT = 128       # input_dim (conv kernel width == feat -> output width 1)
OC = 32          # out_channels per conv branch
EMBD = 128       # embd_size
KHS = (3, 4, 5)  # kernel_heights
NBR = len(KHS)
NTAPS = sum(KHS)                                   # 12 taps total
TAP_BASE = tuple(int(t) for t in np.cumsum((0,) + KHS[:-1]))   # (0, 3, 7)


# ---------------------------------------------------------------------------
# Fused kernel: one wide conv GEMM + shifted adds + bias/ReLU/max-pool +
# fused Linear + ReLU.  One grid step handles TB batch elements.
# ---------------------------------------------------------------------------
def textcnn_kernel(x_ref, wconv_ref, bconv_ref, wfc_ref, bfc_ref, o_ref):
    # x_ref    : (TB*SEQ, FEAT)      bf16   batch folded into GEMM M
    # wconv_ref: (FEAT, NTAPS*OC)    bf16   all conv taps packed along lanes
    # bconv_ref: (1, NBR*OC)         f32    conv biases, branch-packed
    # wfc_ref  : (NBR*OC, EMBD)      bf16   Linear weight (transposed)
    # bfc_ref  : (1, EMBD)           f32
    # o_ref    : (TB, EMBD)          f32
    tb = o_ref.shape[0]
    seq = x_ref.shape[0] // tb

    # Single wide MXU pass covering every tap of every branch.
    p = jnp.dot(x_ref[...], wconv_ref[...],
                preferred_element_type=jnp.float32)       # (tb*seq, NTAPS*OC)
    bconv = bconv_ref[...]                                # (1, NBR*OC)

    rows = []
    for b in range(tb):
        pb = p[b * seq:(b + 1) * seq, :]                  # (seq, NTAPS*OC)
        branch_max = []
        for i, k in enumerate(KHS):
            h = seq - k + 1
            base = TAP_BASE[i]
            # Shifted adds of the wide-GEMM result reproduce the valid conv.
            acc = pb[0:h, base * OC:(base + 1) * OC]
            for kh in range(1, k):
                c0 = (base + kh) * OC
                acc = acc + pb[kh:kh + h, c0:c0 + OC]
            z = jnp.maximum(acc + bconv[:, i * OC:(i + 1) * OC], 0.0)
            branch_max.append(jnp.max(z, axis=0, keepdims=True))    # (1, OC)
        rows.append(jnp.concatenate(branch_max, axis=1))            # (1, NBR*OC)
    pooled = jnp.concatenate(rows, axis=0)                          # (tb, NBR*OC)

    # TODO(synk): Dropout is identity in inference mode; train-mode mask skipped.
    # Linear(3*OC -> EMBD) as ONE dot against the pre-packed weight.
    emb = jnp.dot(pooled.astype(jnp.bfloat16), wfc_ref[...],
                  preferred_element_type=jnp.float32) + bfc_ref[...]
    o_ref[...] = jnp.maximum(emb, 0.0)                              # ReLU


# ---------------------------------------------------------------------------
# Wrapper
# ---------------------------------------------------------------------------
def textcnn_forward(x, kparams, tb=None):
    wconv, bconv, wfc, bfc = kparams
    bsz, seq, feat = x.shape
    if tb is None:
        tb = bsz                       # single grid step: M = B*SEQ
    assert bsz % tb == 0 and (tb == bsz or tb % 8 == 0)
    steps = bsz // tb

    # Fold batch into the GEMM M dimension and feed the MXU bf16 inputs.
    x2 = x.reshape(bsz * seq, feat).astype(jnp.bfloat16)

    return pl.pallas_call(
        textcnn_kernel,
        out_shape=jax.ShapeDtypeStruct((bsz, EMBD), jnp.float32),
        grid_spec=pltpu.PrefetchScalarGridSpec(
            num_scalar_prefetch=0,
            grid=(steps,),
            in_specs=[
                pl.BlockSpec((tb * seq, feat), lambda s: (s, 0)),
                pl.BlockSpec((FEAT, NTAPS * OC), lambda s: (0, 0)),
                pl.BlockSpec((1, NBR * OC), lambda s: (0, 0)),
                pl.BlockSpec((NBR * OC, EMBD), lambda s: (0, 0)),
                pl.BlockSpec((1, EMBD), lambda s: (0, 0)),
            ],
            out_specs=pl.BlockSpec((tb, EMBD), lambda s: (s, 0)),
        ),
        compiler_params=pltpu.CompilerParams(
            dimension_semantics=("parallel",)),
    )(x2, wconv, bconv, wfc, bfc)


# ---------------------------------------------------------------------------
# Deterministic synthetic parameters (shapes from TextCNN.__init__)
# ---------------------------------------------------------------------------
def init_params(key):
    ks = jax.random.split(key, 8)
    p = {}
    for i, k in enumerate(KHS):
        p[f"W{i}"] = 0.05 * jax.random.normal(ks[2 * i], (OC, 1, k, FEAT),
                                              jnp.float32)
        p[f"b{i}"] = 0.05 * jax.random.normal(ks[2 * i + 1], (OC,), jnp.float32)
    p["Wfc"] = 0.05 * jax.random.normal(ks[6], (EMBD, NBR * OC), jnp.float32)
    p["bfc"] = 0.05 * jax.random.normal(ks[7], (EMBD,), jnp.float32)
    return p


def preprocess(p):
    """Pack weights into kernel-friendly, lane-dense, bf16 layouts."""
    tap_blocks = []
    for i, k in enumerate(KHS):
        w = p[f"W{i}"][:, 0]                               # (OC, K, FEAT)
        for kh in range(k):
            tap_blocks.append(jnp.transpose(w[:, kh, :]))  # (FEAT, OC)
    # All 12 taps side-by-side: (FEAT, NTAPS*OC) = (128, 384)
    wconv = jnp.concatenate(tap_blocks, axis=1).astype(jnp.bfloat16)
    # Branch-packed conv bias: (1, 3*OC) = (1, 96), kept f32 for the epilogue.
    bconv = jnp.concatenate([p[f"b{i}"] for i in range(NBR)]).reshape(1, NBR * OC)
    # Linear weight (EMBD, 3*OC) -> (3*OC, EMBD); concat order matches pooled.
    wfc = jnp.transpose(p["Wfc"]).astype(jnp.bfloat16)
    bfc = p["bfc"].reshape(1, EMBD)
    return wconv, bconv, wfc, bfc


# ---------------------------------------------------------------------------
# Pure-JAX reference (inference-mode dropout) for a correctness check
# ---------------------------------------------------------------------------
def reference(x, p):
    prec = lax.Precision.HIGHEST
    dn = ("NCHW", "OIHW", "NCHW")
    xi = x[:, None, :, :]                                  # (B, 1, SEQ, FEAT)
    outs = []
    for i in range(NBR):
        y = lax.conv_general_dilated(xi, p[f"W{i}"], (1, 1), "VALID",
                                     dimension_numbers=dn, precision=prec)
        y = y + p[f"b{i}"][None, :, None, None]            # (B, OC, H, 1)
        y = jnp.maximum(y, 0.0)
        outs.append(jnp.max(y[:, :, :, 0], axis=2))        # (B, OC)
    allo = jnp.concatenate(outs, axis=1)                   # (B, 3*OC)
    e = allo @ p["Wfc"].T + p["bfc"][None, :]
    return jnp.maximum(e, 0.0)


if __name__ == "__main__":
    key = jax.random.PRNGKey(0)
    kx, kp = jax.random.split(key)
    x = jax.random.normal(kx, (B, SEQ, FEAT), jnp.float32)
    params = init_params(kp)
    kparams = preprocess(params)

    fwd = jax.jit(textcnn_forward)
    out = jax.block_until_ready(fwd(x, kparams))           # (B, EMBD)

    ref = jax.block_until_ready(reference(x, params))
    np.testing.assert_allclose(np.asarray(out), np.asarray(ref),
                               rtol=2e-2, atol=2e-2)
    print("KERNEL_OK")
</pallas_src>

<mosaic_0001>
module attributes {stable_mosaic.version = 11 : i64} {
  func.func @textcnn_kernel(%arg0: i32, %arg1: memref<32x128xbf16, #tpu.memory_space<vmem>>, %arg2: memref<128x384xbf16, #tpu.memory_space<vmem>>, %arg3: memref<1x96xf32, #tpu.memory_space<vmem>>, %arg4: memref<96x128xbf16, #tpu.memory_space<vmem>>, %arg5: memref<1x128xf32, #tpu.memory_space<vmem>>, %arg6: memref<2x128xf32, #tpu.memory_space<vmem>>) attributes {dimension_semantics = [#tpu.dimension_semantics<parallel>], iteration_bounds = array<i64: 1>, scalar_prefetch = 0 : i64, scratch_operands = 0 : i64, tpu.core_type = #tpu.core_type<tc>, window_params = [{transform_indices = @transform_0, window_bounds = array<i64: 32, 128>}, {pipeline_mode = #tpu.pipeline_mode<synchronous>, transform_indices = @transform_1, window_bounds = array<i64: 128, 384>}, {pipeline_mode = #tpu.pipeline_mode<synchronous>, transform_indices = @transform_2, window_bounds = array<i64: 1, 96>}, {pipeline_mode = #tpu.pipeline_mode<synchronous>, transform_indices = @transform_3, window_bounds = array<i64: 96, 128>}, {pipeline_mode = #tpu.pipeline_mode<synchronous>, transform_indices = @transform_4, window_bounds = array<i64: 1, 128>}, {transform_indices = @transform_5, window_bounds = array<i64: 2, 128>}]} {
    %c0 = arith.constant 0 : index
    %c0_0 = arith.constant 0 : index
    %0 = vector.load %arg1[%c0, %c0_0] : memref<32x128xbf16, #tpu.memory_space<vmem>>, vector<32x128xbf16>
    %c0_1 = arith.constant 0 : index
    %c0_2 = arith.constant 0 : index
    %1 = vector.load %arg2[%c0_1, %c0_2] : memref<128x384xbf16, #tpu.memory_space<vmem>>, vector<128x384xbf16>
    %cst = arith.constant dense<0.000000e+00> : vector<32x384xf32>
    %2 = tpu.matmul %0, %1, %cst {dimension_numbers = #tpu.dot_dimension_numbers<[1], [0], [0], [1], [0, 0, 1, 1], [], []>} : vector<32x128xbf16>, vector<128x384xbf16>, vector<32x384xf32> -> vector<32x384xf32>
    %c0_3 = arith.constant 0 : index
    %c0_4 = arith.constant 0 : index
    %3 = vector.load %arg3[%c0_3, %c0_4] : memref<1x96xf32, #tpu.memory_space<vmem>>, vector<1x96xf32>
    %4 = vector.extract_strided_slice %2 {offsets = [0, 0], sizes = [16, 384], strides = [1, 1]} : vector<32x384xf32> to vector<16x384xf32>
    %5 = vector.extract_strided_slice %4 {offsets = [0, 0], sizes = [14, 32], strides = [1, 1]} : vector<16x384xf32> to vector<14x32xf32>
    %6 = vector.extract_strided_slice %4 {offsets = [1, 32], sizes = [14, 32], strides = [1, 1]} : vector<16x384xf32> to vector<14x32xf32>
    %7 = arith.addf %5, %6 : vector<14x32xf32>
    %8 = vector.extract_strided_slice %4 {offsets = [2, 64], sizes = [14, 32], strides = [1, 1]} : vector<16x384xf32> to vector<14x32xf32>
    %9 = arith.addf %7, %8 : vector<14x32xf32>
    %10 = vector.extract_strided_slice %3 {offsets = [0, 0], sizes = [1, 32], strides = [1, 1]} : vector<1x96xf32> to vector<1x32xf32>
    %11 = vector.broadcast %10 : vector<1x32xf32> to vector<14x32xf32>
    %12 = arith.addf %9, %11 : vector<14x32xf32>
    %cst_5 = arith.constant 0.000000e+00 : f32
    %13 = vector.broadcast %cst_5 : f32 to vector<14x32xf32>
    %14 = arith.maximumf %12, %13 : vector<14x32xf32>
    %cst_6 = arith.constant dense<0xFF800000> : vector<32xf32>
    %15 = vector.multi_reduction <maximumf>, %14, %cst_6 [0] : vector<14x32xf32> to vector<32xf32>
    %16 = vector.shape_cast %15 : vector<32xf32> to vector<1x32xf32>
    %17 = vector.extract_strided_slice %4 {offsets = [0, 96], sizes = [13, 32], strides = [1, 1]} : vector<16x384xf32> to vector<13x32xf32>
    %18 = vector.extract_strided_slice %4 {offsets = [1, 128], sizes = [13, 32], strides = [1, 1]} : vector<16x384xf32> to vector<13x32xf32>
    %19 = arith.addf %17, %18 : vector<13x32xf32>
    %20 = vector.extract_strided_slice %4 {offsets = [2, 160], sizes = [13, 32], strides = [1, 1]} : vector<16x384xf32> to vector<13x32xf32>
    %21 = arith.addf %19, %20 : vector<13x32xf32>
    %22 = vector.extract_strided_slice %4 {offsets = [3, 192], sizes = [13, 32], strides = [1, 1]} : vector<16x384xf32> to vector<13x32xf32>
    %23 = arith.addf %21, %22 : vector<13x32xf32>
    %24 = vector.extract_strided_slice %3 {offsets = [0, 32], sizes = [1, 32], strides = [1, 1]} : vector<1x96xf32> to vector<1x32xf32>
    %25 = vector.broadcast %24 : vector<1x32xf32> to vector<13x32xf32>
    %26 = arith.addf %23, %25 : vector<13x32xf32>
    %cst_7 = arith.constant 0.000000e+00 : f32
    %27 = vector.broadcast %cst_7 : f32 to vector<13x32xf32>
    %28 = arith.maximumf %26, %27 : vector<13x32xf32>
    %cst_8 = arith.constant dense<0xFF800000> : vector<32xf32>
    %29 = vector.multi_reduction <maximumf>, %28, %cst_8 [0] : vector<13x32xf32> to vector<32xf32>
    %30 = vector.shape_cast %29 : vector<32xf32> to vector<1x32xf32>
    %31 = vector.extract_strided_slice %4 {offsets = [0, 224], sizes = [12, 32], strides = [1, 1]} : vector<16x384xf32> to vector<12x32xf32>
    %32 = vector.extract_strided_slice %4 {offsets = [1, 256], sizes = [12, 32], strides = [1, 1]} : vector<16x384xf32> to vector<12x32xf32>
    %33 = arith.addf %31, %32 : vector<12x32xf32>
    %34 = vector.extract_strided_slice %4 {offsets = [2, 288], sizes = [12, 32], strides = [1, 1]} : vector<16x384xf32> to vector<12x32xf32>
    %35 = arith.addf %33, %34 : vector<12x32xf32>
    %36 = vector.extract_strided_slice %4 {offsets = [3, 320], sizes = [12, 32], strides = [1, 1]} : vector<16x384xf32> to vector<12x32xf32>
    %37 = arith.addf %35, %36 : vector<12x32xf32>
    %38 = vector.extract_strided_slice %4 {offsets = [4, 352], sizes = [12, 32], strides = [1, 1]} : vector<16x384xf32> to vector<12x32xf32>
    %39 = arith.addf %37, %38 : vector<12x32xf32>
    %40 = vector.extract_strided_slice %3 {offsets = [0, 64], sizes = [1, 32], strides = [1, 1]} : vector<1x96xf32> to vector<1x32xf32>
    %41 = vector.broadcast %40 : vector<1x32xf32> to vector<12x32xf32>
    %42 = arith.addf %39, %41 : vector<12x32xf32>
    %cst_9 = arith.constant 0.000000e+00 : f32
    %43 = vector.broadcast %cst_9 : f32 to vector<12x32xf32>
    %44 = arith.maximumf %42, %43 : vector<12x32xf32>
    %cst_10 = arith.constant dense<0xFF800000> : vector<32xf32>
    %45 = vector.multi_reduction <maximumf>, %44, %cst_10 [0] : vector<12x32xf32> to vector<32xf32>
    %46 = vector.shape_cast %45 : vector<32xf32> to vector<1x32xf32>
    %47 = tpu.concatenate %16, %30, %46 in 1 : vector<1x32xf32>, vector<1x32xf32>, vector<1x32xf32> -> vector<1x96xf32>
    %48 = vector.extract_strided_slice %2 {offsets = [16, 0], sizes = [16, 384], strides = [1, 1]} : vector<32x384xf32> to vector<16x384xf32>
    %49 = vector.extract_strided_slice %48 {offsets = [0, 0], sizes = [14, 32], strides = [1, 1]} : vector<16x384xf32> to vector<14x32xf32>
    %50 = vector.extract_strided_slice %48 {offsets = [1, 32], sizes = [14, 32], strides = [1, 1]} : vector<16x384xf32> to vector<14x32xf32>
    %51 = arith.addf %49, %50 : vector<14x32xf32>
    %52 = vector.extract_strided_slice %48 {offsets = [2, 64], sizes = [14, 32], strides = [1, 1]} : vector<16x384xf32> to vector<14x32xf32>
    %53 = arith.addf %51, %52 : vector<14x32xf32>
    %54 = vector.extract_strided_slice %3 {offsets = [0, 0], sizes = [1, 32], strides = [1, 1]} : vector<1x96xf32> to vector<1x32xf32>
    %55 = vector.broadcast %54 : vector<1x32xf32> to vector<14x32xf32>
    %56 = arith.addf %53, %55 : vector<14x32xf32>
    %cst_11 = arith.constant 0.000000e+00 : f32
    %57 = vector.broadcast %cst_11 : f32 to vector<14x32xf32>
    %58 = arith.maximumf %56, %57 : vector<14x32xf32>
    %cst_12 = arith.constant dense<0xFF800000> : vector<32xf32>
    %59 = vector.multi_reduction <maximumf>, %58, %cst_12 [0] : vector<14x32xf32> to vector<32xf32>
    %60 = vector.shape_cast %59 : vector<32xf32> to vector<1x32xf32>
    %61 = vector.extract_strided_slice %48 {offsets = [0, 96], sizes = [13, 32], strides = [1, 1]} : vector<16x384xf32> to vector<13x32xf32>
    %62 = vector.extract_strided_slice %48 {offsets = [1, 128], sizes = [13, 32], strides = [1, 1]} : vector<16x384xf32> to vector<13x32xf32>
    %63 = arith.addf %61, %62 : vector<13x32xf32>
    %64 = vector.extract_strided_slice %48 {offsets = [2, 160], sizes = [13, 32], strides = [1, 1]} : vector<16x384xf32> to vector<13x32xf32>
    %65 = arith.addf %63, %64 : vector<13x32xf32>
    %66 = vector.extract_strided_slice %48 {offsets = [3, 192], sizes = [13, 32], strides = [1, 1]} : vector<16x384xf32> to vector<13x32xf32>
    %67 = arith.addf %65, %66 : vector<13x32xf32>
    %68 = vector.extract_strided_slice %3 {offsets = [0, 32], sizes = [1, 32], strides = [1, 1]} : vector<1x96xf32> to vector<1x32xf32>
    %69 = vector.broadcast %68 : vector<1x32xf32> to vector<13x32xf32>
    %70 = arith.addf %67, %69 : vector<13x32xf32>
    %cst_13 = arith.constant 0.000000e+00 : f32
    %71 = vector.broadcast %cst_13 : f32 to vector<13x32xf32>
    %72 = arith.maximumf %70, %71 : vector<13x32xf32>
    %cst_14 = arith.constant dense<0xFF800000> : vector<32xf32>
    %73 = vector.multi_reduction <maximumf>, %72, %cst_14 [0] : vector<13x32xf32> to vector<32xf32>
    %74 = vector.shape_cast %73 : vector<32xf32> to vector<1x32xf32>
    %75 = vector.extract_strided_slice %48 {offsets = [0, 224], sizes = [12, 32], strides = [1, 1]} : vector<16x384xf32> to vector<12x32xf32>
    %76 = vector.extract_strided_slice %48 {offsets = [1, 256], sizes = [12, 32], strides = [1, 1]} : vector<16x384xf32> to vector<12x32xf32>
    %77 = arith.addf %75, %76 : vector<12x32xf32>
    %78 = vector.extract_strided_slice %48 {offsets = [2, 288], sizes = [12, 32], strides = [1, 1]} : vector<16x384xf32> to vector<12x32xf32>
    %79 = arith.addf %77, %78 : vector<12x32xf32>
    %80 = vector.extract_strided_slice %48 {offsets = [3, 320], sizes = [12, 32], strides = [1, 1]} : vector<16x384xf32> to vector<12x32xf32>
    %81 = arith.addf %79, %80 : vector<12x32xf32>
    %82 = vector.extract_strided_slice %48 {offsets = [4, 352], sizes = [12, 32], strides = [1, 1]} : vector<16x384xf32> to vector<12x32xf32>
    %83 = arith.addf %81, %82 : vector<12x32xf32>
    %84 = vector.extract_strided_slice %3 {offsets = [0, 64], sizes = [1, 32], strides = [1, 1]} : vector<1x96xf32> to vector<1x32xf32>
    %85 = vector.broadcast %84 : vector<1x32xf32> to vector<12x32xf32>
    %86 = arith.addf %83, %85 : vector<12x32xf32>
    %cst_15 = arith.constant 0.000000e+00 : f32
    %87 = vector.broadcast %cst_15 : f32 to vector<12x32xf32>
    %88 = arith.maximumf %86, %87 : vector<12x32xf32>
    %cst_16 = arith.constant dense<0xFF800000> : vector<32xf32>
    %89 = vector.multi_reduction <maximumf>, %88, %cst_16 [0] : vector<12x32xf32> to vector<32xf32>
    %90 = vector.shape_cast %89 : vector<32xf32> to vector<1x32xf32>
    %91 = tpu.concatenate %60, %74, %90 in 1 : vector<1x32xf32>, vector<1x32xf32>, vector<1x32xf32> -> vector<1x96xf32>
    %92 = tpu.concatenate %47, %91 in 0 : vector<1x96xf32>, vector<1x96xf32> -> vector<2x96xf32>
    %93 = arith.truncf %92 : vector<2x96xf32> to vector<2x96xbf16>
    %c0_17 = arith.constant 0 : index
    %c0_18 = arith.constant 0 : index
    %94 = vector.load %arg4[%c0_17, %c0_18] : memref<96x128xbf16, #tpu.memory_space<vmem>>, vector<96x128xbf16>
    %cst_19 = arith.constant dense<0.000000e+00> : vector<2x128xf32>
    %95 = tpu.matmul %93, %94, %cst_19 {dimension_numbers = #tpu.dot_dimension_numbers<[1], [0], [0], [1], [0, 0, 1, 1], [], []>} : vector<2x96xbf16>, vector<96x128xbf16>, vector<2x128xf32> -> vector<2x128xf32>
    %c0_20 = arith.constant 0 : index
    %c0_21 = arith.constant 0 : index
    %96 = vector.load %arg5[%c0_20, %c0_21] : memref<1x128xf32, #tpu.memory_space<vmem>>, vector<1x128xf32>
    %97 = vector.broadcast %96 : vector<1x128xf32> to vector<2x128xf32>
    %98 = arith.addf %95, %97 : vector<2x128xf32>
    %cst_22 = arith.constant 0.000000e+00 : f32
    %99 = vector.broadcast %cst_22 : f32 to vector<2x128xf32>
    %100 = arith.maximumf %98, %99 : vector<2x128xf32>
    %c0_23 = arith.constant 0 : index
    %c0_24 = arith.constant 0 : index
    %101 = vector.load %arg6[%c0_23, %c0_24] : memref<2x128xf32, #tpu.memory_space<vmem>>, vector<2x128xf32>
    tpu.vector_store %arg6[%c0_23, %c0_24], %100 {strides = array<i32>} : memref<2x128xf32, #tpu.memory_space<vmem>>, vector<2x128xf32>,
    return
  }
  func.func @transform_0(%arg0: i32) -> (i32, i32) {
    %c0_i32 = arith.constant 0 : i32
    %c0_i32_0 = arith.constant 0 : i32
    return %arg0, %c0_i32 : i32, i32
  }
  func.func @transform_1(%arg0: i32) -> (i32, i32) {
    %c0_i32 = arith.constant 0 : i32
    %c0_i32_0 = arith.constant 0 : i32
    %c0_i32_1 = arith.constant 0 : i32
    return %c0_i32, %c0_i32_0 : i32, i32
  }
  func.func @transform_2(%arg0: i32) -> (i32, i32) {
    %c0_i32 = arith.constant 0 : i32
    %c0_i32_0 = arith.constant 0 : i32
    %c0_i32_1 = arith.constant 0 : i32
    return %c0_i32, %c0_i32_0 : i32, i32
  }
  func.func @transform_3(%arg0: i32) -> (i32, i32) {
    %c0_i32 = arith.constant 0 : i32
    %c0_i32_0 = arith.constant 0 : i32
    %c0_i32_1 = arith.constant 0 : i32
    return %c0_i32, %c0_i32_0 : i32, i32
  }
  func.func @transform_4(%arg0: i32) -> (i32, i32) {
    %c0_i32 = arith.constant 0 : i32
    %c0_i32_0 = arith.constant 0 : i32
    %c0_i32_1 = arith.constant 0 : i32
    return %c0_i32, %c0_i32_0 : i32, i32
  }
  func.func @transform_5(%arg0: i32) -> (i32, i32) {
    %c0_i32 = arith.constant 0 : i32
    %c0_i32_0 = arith.constant 0 : i32
    return %arg0, %c0_i32 : i32, i32
  }
}

</mosaic_0001>

<bundles_post_ra>
// kernel: textcnn_forward.1
= control target key start
LH: loop header
LB: loop body
LE: loop exit
PB: predicated region body
PF: predicated region fallthrough
CT: control target
= control target key end

     0   :  { %10 = vsyncpa [#allocation3], 0  ;;  %s1204_s0 = inlined_call_operand.vmem [shape: bf16[32,128], index: 0, kind: input, shape index: {}]   ;;  %s1205_s1 = inlined_call_operand.hbm [shape: bf16[128,384], index: 1, kind: input, shape index: {}]   ;;  %s1206_s2 = inlined_call_operand.vmem [shape: f32[1,96], index: 2, kind: input, shape index: {}]   ;;  %s1207_s3 = inlined_call_operand.vmem [shape: bf16[96,128], index: 3, kind: input, shape index: {}]   ;;  %s1208_s4 = inlined_call_operand.vmem [shape: f32[1,128], index: 4, kind: input, shape index: {}]   ;;  %s1209_s5 = inlined_call_operand.hbm [shape: f32[2,128], index: 5, kind: output, shape index: {}]  }
   0x1   :  { %11 = vsyncpa [#allocation4], 0  ;;  %s950_s18 = smov [#allocation2]   ;;  %s902_s22 = scalar_lea.hbm %s1205_s1, 3072 }
   0x2   :  { %s19_s19 = sshll.u32 %s950_s18, 4  ;;  %p903_p0 = scmp.ne.s32.totalorder %s1205_s1, %s902_s22  ;;  %s20_s19 = int_to_ptr.vmem [resolvable:$true] %s19_s19 }
   0x3   :  { %p906_p1 = scmp.lt.u32.totalorder %s902_s22, %s1205_s1 }
   0x5   :  { %p908_p2 = pnand %p906_p1, %p903_p0 }
   0x7   :  { %911 = shalt.err (!%p908_p2)
}
   0x8   :  { %s912_s27 = scalar_lea.vmem %s20_s19, 3072  ;;  %p917_p4 = scmp.lt.s32.totalorder %s20_s19, %s20_s19 }
   0x9   :  { %p913_p3 = scmp.ne.s32.totalorder %s20_s19, %s912_s27  ;;  %p918_p5 = scmp.lt.s32.totalorder %s912_s27, %s912_s27 }
   0xb   :  { %p919_p6 = por %p918_p5, %p917_p4 }
   0xd   :  { %p920_p7 = pnand %p919_p6, %p913_p3 }
   0xf   :  { %923 = shalt.err (!%p920_p7)
}
  0x10   :  { %s951_s28 = smov 192   ;;  %s952_s29 = smov 12  }
  0x11   :  { %25 = dma.hbm_to_vmem [thread:$0]  %s1205_s1, 3072, %s20_s19, [#allocation3], %s951_s28, %s951_s28, %s952_s29  }
  0x12   :  { %946 = dma.done.wait [#allocation3], 3072  }
  0x13   :  { %947 = vsyncadd [#allocation3], 4294964224  ;;  %v953_v0 = vmov 0   ;;  %v862_v1 = vld [vmem:[#allocation2 + $0x8] ss:$12 sps:$4 sm:$0xff]   ;;  %v889_v25 = vld [vmem:[%s1204_s0 + $0x8] sm:$0xff]  }
  0x14   :  { %244 = vmatprep.mubr.bf16.mxu0 %v953_v0  ;;  %v863_v2 = vld [vmem:[#allocation2 + $0x20] ss:$12 sps:$4 sm:$0xff]   ;;  %811 = vmatprep.subr.bf16.mxu1 %v862_v1  ;;  %v864_v3 = vld [vmem:[#allocation2 + $0x38] ss:$12 sps:$4 sm:$0xff]   ;;  %v869_v6 = vld [vmem:[#allocation2 + $0x1c] ss:$12 sps:$4 sm:$0xff]  }
  0x15   :  { %812 = vmatpush3.bf16.msra.mxu1 %v862_v1  ;;  %v865_v4 = vld [vmem:[#allocation2 + $0x4] ss:$12 sps:$4 sm:$0xff]   ;;  %v867_v5 = vld [vmem:[#allocation2] ss:$12 sps:$4 sm:$0xff]   ;;  %v872_v12 = vld [vmem:[#allocation2 + $0x68] ss:$12 sps:$4 sm:$0xff]  }
  0x16   :  { %813 = vmatprep.subr.bf16.mxu1 %v863_v2  ;;  %212 = vmatprep.subr.bf16.mxu0 %v865_v4  ;;  %v871_v7 = vld [vmem:[#allocation2 + $0x18] ss:$12 sps:$4 sm:$0xff]   ;;  %v868_v8 = vld [vmem:[#allocation2 + $0x50] ss:$12 sps:$4 sm:$0xff]   ;;  %v873_v9 = vld [vmem:[#allocation2 + $0x34] ss:$12 sps:$4 sm:$0xff]  }
  0x17   :  { %213 = vmatpush1.bf16.msra.mxu0 %v867_v5  ;;  %v875_v10 = vld [vmem:[#allocation2 + $0x30] ss:$12 sps:$4 sm:$0xff]   ;;  %v877_v11 = vld [vmem:[#allocation2 + $0x4c] ss:$12 sps:$4 sm:$0xff]   ;;  %v879_v13 = vld [vmem:[#allocation2 + $0x48] ss:$12 sps:$4 sm:$0xff]  }
  0x18   :  { %214 = vmatprep.subr.bf16.mxu0 %v869_v6  ;;  %v876_v14 = vld [vmem:[#allocation2 + $0x80] ss:$12 sps:$4 sm:$0xff]   ;;  %v881_v15 = vld [vmem:[#allocation2 + $0x64] ss:$12 sps:$4 sm:$0xff]   ;;  %v885_v18 = vld [vmem:[#allocation2 + $0x7c] ss:$12 sps:$4 sm:$0xff]  }
  0x19   :  { %814 = vmatpush3.bf16.msra.mxu1 %v863_v2  ;;  %v888_v16 = vld [vmem:[%s1204_s0] sm:$0xff]   ;;  %v883_v17 = vld [vmem:[#allocation2 + $0x60] ss:$12 sps:$4 sm:$0xff]   ;;  %v880_v19 = vld [vmem:[#allocation2 + $0x98] ss:$12 sps:$4 sm:$0xff]   ;;  %vm317_vm0 = vcmask 1046528  }
  0x1a   :  { %815 = vmatprep.subr.bf16.mxu1 %v864_v3  ;;  %827 = vmatprep.mubr.bf16.mxu1 %v888_v16  ;;  %v887_v20 = vld [vmem:[#allocation2 + $0x78] ss:$12 sps:$4 sm:$0xff]   ;;  %v890_v21 = vld [vmem:[#allocation2 + $0x94] ss:$12 sps:$4 sm:$0xff]   ;;  %v884_v22 = vld [vmem:[#allocation2 + $0xb0] ss:$12 sps:$4 sm:$0xff]  }
  0x1b   :  { %215 = vmatpush1.bf16.msra.mxu0 %v871_v7  ;;  %v892_v23 = vld [vmem:[#allocation2 + $0x90] ss:$12 sps:$4 sm:$0xff]   ;;  %v893_v24 = vld [vmem:[#allocation2 + $0xac] ss:$12 sps:$4 sm:$0xff]   ;;  %v895_v26 = vld [vmem:[#allocation2 + $0xa8] ss:$12 sps:$4 sm:$0xff]  }
  0x1c   :  { %216 = vmatprep.subr.bf16.mxu0 %v873_v9  ;;  %vm329_vm1 = vcmask 1045504   ;;  %vm386_vm2 = vcmask 1044480   ;;  %vm451_vm3 = vcmask 1043456   ;;  %s954_s0 = smov 64   ;;  %s955_s10 = smov 96   ;;  %vm405_vm4 = vcmask 1048320  }
  0x1d   :  { %816 = vmatpush3.bf16.msra.mxu1 %v864_v3  ;;  %s956_s11 = smov 32   ;;  %vm407_vm5 = vcmask 1045248   ;;  %vm467_vm6 = vcmask 1044224   ;;  %vm351_vm7 = vcmask 261120   ;;  %vm353_vm8 = vcmask 259072   ;;  %s959_s26 = smov [#allocation5]  }
  0x1e   :  { %817 = vmatprep.subr.bf16.mxu1 %v868_v8  ;;  %vm958_vm9 = vmmov 0   ;;  %vm485_vm10 = vcmask 523264   ;;  %vm640_vm11 = vcmask 1040384   ;;  %vm698_vm12 = vcmask 785408   ;;  %s750_s27 = sshll.u32 %s959_s26, 4  ;;  %s751_s27 = int_to_ptr.vmem [resolvable:$true] %s750_s27 }
  0x1f   :  { %217 = vmatpush1.bf16.msra.mxu0 %v875_v10  ;;  %s924_s28 = scalar_lea.vmem %s751_s27, 32  ;;  %p929_p9 = scmp.lt.s32.totalorder %s751_s27, %s751_s27 }
  0x20   :  { %218 = vmatprep.subr.bf16.mxu0 %v877_v11  ;;  %p925_p8 = scmp.ne.s32.totalorder %s751_s27, %s924_s28  ;;  %p930_p10 = scmp.lt.s32.totalorder %s924_s28, %s924_s28 }
  0x21   :  { %818 = vmatpush3.bf16.msra.mxu1 %v868_v8 }
  0x22   :  { %819 = vmatprep.subr.bf16.mxu1 %v872_v12  ;;  %p931_p11 = por %p930_p10, %p929_p9 }
  0x23   :  { %219 = vmatpush1.bf16.msra.mxu0 %v879_v13 }
  0x24   :  { %220 = vmatprep.subr.bf16.mxu0 %v881_v15  ;;  %p932_p12 = pnand %p931_p11, %p925_p8 }
  0x25   :  { %820 = vmatpush3.bf16.msra.mxu1 %v872_v12 }
  0x26   :  { %821 = vmatprep.subr.bf16.mxu1 %v876_v14 }
  0x27   :  { %221 = vmatpush1.bf16.msra.mxu0 %v883_v17 }
  0x28   :  { %222 = vmatprep.subr.bf16.mxu0 %v885_v18 }
  0x29   :  { %822 = vmatpush3.bf16.msra.mxu1 %v876_v14 }
  0x2a   :  { %823 = vmatprep.subr.bf16.mxu1 %v880_v19 }
  0x2b   :  { %223 = vmatpush1.bf16.msra.mxu0 %v887_v20 }
  0x2c   :  { %224 = vmatprep.subr.bf16.mxu0 %v890_v21 }
  0x2d   :  { %824 = vmatpush3.bf16.msra.mxu1 %v880_v19 }
  0x2e   :  { %825 = vmatprep.subr.bf16.mxu1 %v884_v22 }
  0x2f   :  { %225 = vmatpush1.bf16.msra.mxu0 %v892_v23 }
  0x30   :  { %226 = vmatprep.subr.bf16.mxu0 %v893_v24 }
  0x31   :  { %826 = vmatpush3.bf16.msra.mxu1 %v884_v22 }
  0x33   :  { %227 = vmatpush1.bf16.msra.mxu0 %v895_v26 }
  0x34   :  { %828 = vmatmul.mubr.bf16.vlgmr.msra.gmra.mrb[0].mxu1 %v889_v25 }
  0x36   :  { %245 = vmatmul.mubr.bf16.vlgmr.msra.gmra.mrb[0].mxu0 %v888_v16 }
  0x37   :  { %254 = vmatprep.mubr.bf16.mxu0 %v953_v0 }
  0x3e   :  { %255 = vmatmul.mubr.bf16.gmra.mrb[4].mxu0 %v889_v25 }
 0x107   :  { %v829_v27 = vpop.f32.mrb[0].mxu1 }
 0x108   :  { %v574_v28 = vrot.slane %v829_v27, 1  ;;  %v585_v29 = vrot.slane %v829_v27, 2  ;;  %v596_v30 = vrot.slane %v829_v27, 3  ;;  %v607_v31 = vrot.slane %v829_v27, 4  ;;  %v299_v32 = vpop.f32.mrb[1].mxu1 }
 0x109   :  { %v418_v33 = vrot.slane %v299_v32, 1  ;;  %v429_v34 = vrot.slane %v299_v32, 2  ;;  %v440_v35 = vrot.slane %v299_v32, 3  ;;  %v452_v36 = vrot.slane %v299_v32, 4  ;;  %v1008_v37 = vpop.f32.mrb[2].mxu1  ;;  %v1015_v42 = vpop.f32.mrb[0].mxu0 }
 0x10a   :  { %v1010_v38 = vpop.f32.mrb[3].mxu1  ;;  %v586_v39 = vrot.slane %v1008_v37, 2  ;;  %v575_v40 = vrot.slane %v1008_v37, 1  ;;  %v597_v41 = vrot.slane %v1008_v37, 3  ;;  %v608_v43 = vrot.slane %v1008_v37, 4  ;;  %v1022_v48 = vpop.f32.mrb[1].mxu0 }
 0x10b   :  { %v419_v44 = vrot.slane %v1010_v38, 1  ;;  %v430_v45 = vrot.slane %v1010_v38, 2  ;;  %v441_v46 = vrot.slane %v1010_v38, 3  ;;  %v453_v47 = vrot.slane %v1010_v38, 4  ;;  %v1030_v53 = vpop.f32.mrb[2].mxu0  ;;  %v897_v32 = vld [vmem:[%s1207_s3 + $0x8] sm:$0xff]  }
 0x10c   :  { %590 = vrot.lane.b32.xlu1 %v586_v39, %s954_s0  ;;  %579 = vrot.lane.b32.xlu0 %v575_v40, %s955_s10  ;;  %v576_v49 = vsel %vm317_vm0, %v574_v28, %v575_v40  ;;  %v318_v50 = vrot.slane %v1015_v42, 1  ;;  %v330_v51 = vrot.slane %v1015_v42, 2  ;;  %v364_v52 = vrot.slane %v1022_v48, 1  ;;  %v1036_v58 = vpop.f32.mrb[3].mxu0 }
 0x10d   :  { %v375_v54 = vrot.slane %v1022_v48, 2  ;;  %v387_v55 = vrot.slane %v1022_v48, 3  ;;  %v319_v56 = vrot.slane %v1030_v53, 1  ;;  %v331_v57 = vrot.slane %v1030_v53, 2 }
 0x10e   :  { %v587_v59 = vsel %vm329_vm1, %v585_v29, %v586_v39  ;;  %v388_v60 = vrot.slane %v1036_v58, 3  ;;  %v598_v61 = vsel %vm386_vm2, %v596_v30, %v597_v41  ;;  %v365_v62 = vrot.slane %v1036_v58, 1  ;;  %v1108_v29 = vld [vmem:[%s1206_s2] ss:$0 sm:$0xff] }
 0x10f   :  { %v420_v63 = vsel %vm317_vm0, %v418_v33, %v419_v44  ;;  %v376_v0 = vrot.slane %v1036_v58, 2  ;;  %v431_v1 = vsel %vm329_vm1, %v429_v34, %v430_v45  ;;  %v442_v2 = vsel %vm386_vm2, %v440_v35, %v441_v46  ;;  %v896_v30 = vld [vmem:[%s1207_s3] sm:$0xff]   ;;  %v898_v33 = vld [vmem:[%s1207_s3 + $0x10] sm:$0xff]  }
 0x110   :  { %601 = vrot.lane.b32.xlu1 %v597_v41, %s956_s11  ;;  %577 = vrot.lane.b32.xlu0 %v576_v49, %s955_s10  ;;  %v366_v3 = vsel %vm317_vm0, %v364_v52, %v365_v62  ;;  %v389_v4 = vsel %vm386_vm2, %v387_v55, %v388_v60  ;;  %v320_v5 = vsel %vm317_vm0, %v318_v50, %v319_v56 }
 0x111   :  { %v377_v6 = vsel %vm329_vm1, %v375_v54, %v376_v0  ;;  %v332_v7 = vsel %vm329_vm1, %v330_v51, %v331_v57  ;;  %v1060_v8 = vsel %vm451_vm3, %v607_v31, %v608_v43  ;;  %v1065_v9 = vsel %vm451_vm3, %v452_v36, %v453_v47  ;;  %v1067_v10 = vpop.f32.mrb[4].mxu0 }
 0x112   :  { %v489_v11 = vrot.slane %v1067_v10, 1  ;;  %v500_v12 = vrot.slane %v1067_v10, 2  ;;  %v1071_v13 = vpop.f32.mrb[5].mxu0  ;;  %v957_v31 = vmov 0.0  }
 0x113   :  { %v526_v14 = vrot.slane %v1071_v13, 1  ;;  %v537_v15 = vrot.slane %v1071_v13, 2  ;;  %v548_v16 = vrot.slane %v1071_v13, 3  ;;  %v1078_v17 = vpop.f32.mrb[6].mxu0  ;;  %831 = vmatprep.subr.bf16.mxu0 %v957_v31  ;;  %843 = vmatprep.mubr.msk.bf16.mxu0 %vm958_vm9, %v957_v31 }
 0x114   :  { %588 = vrot.lane.b32.xlu0 %v587_v59, %s954_s0  ;;  %423 = vrot.lane.b32.xlu1 %v419_v44, %s955_s10  ;;  %v490_v18 = vrot.slane %v1078_v17, 1  ;;  %v501_v19 = vrot.slane %v1078_v17, 2  ;;  %v262_v20 = vpop.f32.mrb[7].mxu0 }
 0x115   :  { %v527_v21 = vrot.slane %v262_v20, 1  ;;  %v538_v22 = vrot.slane %v262_v20, 2  ;;  %v549_v23 = vrot.slane %v262_v20, 3  ;;  %832 = vmatpush3.bf16.msra.mxu0 %v896_v30 }
 0x116   :  { %v491_v24 = vsel %vm317_vm0, %v489_v11, %v490_v18  ;;  %v502_v25 = vsel %vm329_vm1, %v500_v12, %v501_v19  ;;  %833 = vmatprep.subr.bf16.mxu0 %v957_v31 }
 0x117   :  { %v539_v26 = vsel %vm329_vm1, %v537_v15, %v538_v22  ;;  %v528_v27 = vsel %vm317_vm0, %v526_v14, %v527_v21  ;;  %v550_v28 = vsel %vm386_vm2, %v548_v16, %v549_v23 }
 0x118   :  { %599 = vrot.lane.b32.xlu0 %v598_v61, %s956_s11  ;;  %369 = vrot.lane.b32.xlu1 %v365_v62, %s955_s10 }
 0x119   :  { %834 = vmatpush3.bf16.msra.mxu0 %v897_v32 }
 0x11a   :  { %835 = vmatprep.subr.bf16.mxu0 %v957_v31 }
 0x11c   :  { %421 = vrot.lane.b32.xlu0 %v420_v63, %s955_s10  ;;  %434 = vrot.lane.b32.xlu1 %v430_v45, %s954_s0 }
 0x11d   :  { %836 = vmatpush3.bf16.msra.mxu0 %v898_v33 }
 0x11e   :  { %837 = vmatprep.subr.bf16.mxu0 %v957_v31 }
 0x120   :  { %380 = vrot.lane.b32.xlu1 %v376_v0, %s954_s0  ;;  %367 = vrot.lane.b32.xlu0 %v366_v3, %s955_s10 }
 0x124   :  { %445 = vrot.lane.b32.xlu1 %v441_v46, %s956_s11  ;;  %432 = vrot.lane.b32.xlu0 %v431_v1, %s954_s0 }
 0x128   :  { %378 = vrot.lane.b32.xlu0 %v377_v6, %s954_s0  ;;  %531 = vrot.lane.b32.xlu1 %v527_v21, %s955_s10 }
 0x12c   :  { %443 = vrot.lane.b32.xlu0 %v442_v2, %s956_s11  ;;  %542 = vrot.lane.b32.xlu1 %v538_v22, %s954_s0 }
 0x130   :  { %390 = vrot.lane.b32.xlu0 %v389_v4, %s956_s11  ;;  %553 = vrot.lane.b32.xlu1 %v549_v23, %s956_s11 }
 0x134   :  { %540 = vrot.lane.b32.xlu0 %v539_v26, %s954_s0  ;;  %529 = vrot.lane.b32.xlu1 %v528_v27, %s955_s10 }
 0x138   :  { %551 = vrot.lane.b32.xlu0 %v550_v28, %s956_s11  ;;  %392 = vrot.lane.b32.xlu1 %v388_v60, %s956_s11 }
 0x13c   :  { %398 = vrot.lane.b32.xlu0 %v1108_v29, %s954_s0  ;;  %459 = vrot.lane.b32.xlu1 %v1108_v29, %s956_s11 }
 0x140   :  { %492 = vrot.lane.b32.xlu0 %v491_v24, %s955_s10  ;;  %494 = vrot.lane.b32.xlu1 %v490_v18, %s955_s10 }
 0x144   :  { %321 = vrot.lane.b32.xlu0 %v320_v5, %s955_s10  ;;  %323 = vrot.lane.b32.xlu1 %v319_v56, %s955_s10 }
 0x148   :  { %503 = vrot.lane.b32.xlu0 %v502_v25, %s954_s0  ;;  %505 = vrot.lane.b32.xlu1 %v501_v19, %s954_s0 }
 0x14c   :  { %333 = vrot.lane.b32.xlu0 %v332_v7, %s954_s0  ;;  %335 = vrot.lane.b32.xlu1 %v331_v57, %s954_s0 }
 0x17e   :  { %v591_v34 = vpop.permute.xlu1 %590  ;;  %v580_v35 = vpop.permute.xlu0 %579 }
 0x17f   :  { %v584_v36 = vadd.f32 %v580_v35, %v262_v20 }
 0x181   :  { %v595_v39 = vadd.f32 %v591_v34, %v584_v36 }
 0x182   :  { %v602_v40 = vpop.permute.xlu1 %601  ;;  %v578_v41 = vpop.permute.xlu0 %577 }
 0x183   :  { %v606_v44 = vadd.f32 %v602_v40, %v595_v39  ;;  %v583_v50 = vadd.f32 %v578_v41, %v1071_v13 }
 0x185   :  { %v613_v45 = vadd.f32 %v608_v43, %v606_v44 }
 0x186   :  { %v589_v46 = vpop.permute.xlu0 %588  ;;  %v424_v49 = vpop.permute.xlu1 %423 }
 0x187   :  { %v594_v51 = vadd.f32 %v589_v46, %v583_v50  ;;  %v428_v62 = vadd.f32 %v424_v49, %v1036_v58 }
 0x18a   :  { %v600_v52 = vpop.permute.xlu0 %599  ;;  %v370_v54 = vpop.permute.xlu1 %369 }
 0x18b   :  { %v605_v55 = vadd.f32 %v600_v52, %v594_v51  ;;  %v374_v16 = vadd.f32 %v370_v54, %v1030_v53 }
 0x18d   :  { %v612_v56 = vadd.f32 %v1060_v8, %v605_v55 }
 0x18e   :  { %v422_v57 = vpop.permute.xlu0 %421  ;;  %v435_v59 = vpop.permute.xlu1 %434 }
 0x18f   :  { %v439_v63 = vadd.f32 %v435_v59, %v428_v62  ;;  %v427_v4 = vadd.f32 %v422_v57, %v1022_v48 }
 0x192   :  { %v381_v60 = vpop.permute.xlu1 %380  ;;  %v368_v61 = vpop.permute.xlu0 %367 }
 0x193   :  { %v373_v38 = vadd.f32 %v368_v61, %v1015_v42  ;;  %v385_v20 = vadd.f32 %v381_v60, %v374_v16 }
 0x196   :  { %v446_v0 = vpop.permute.xlu1 %445  ;;  %v433_v37 = vpop.permute.xlu0 %432 }
 0x197   :  { %v450_v43 = vadd.f32 %v446_v0, %v439_v63  ;;  %v438_v5 = vadd.f32 %v433_v37, %v427_v4 }
 0x199   :  { %v458_v1 = vadd.f32 %v453_v47, %v450_v43 }
 0x19a   :  { %v379_v2 = vpop.permute.xlu0 %378  ;;  %v532_v3 = vpop.permute.xlu1 %531 }
 0x19b   :  { %v536_v47 = vadd.f32 %v532_v3, %v1078_v17  ;;  %v384_v21 = vadd.f32 %v379_v2, %v373_v38 }
 0x19e   :  { %v444_v6 = vpop.permute.xlu0 %443  ;;  %v543_v7 = vpop.permute.xlu1 %542 }
 0x19f   :  { %v449_v8 = vadd.f32 %v444_v6, %v438_v5  ;;  %v547_v22 = vadd.f32 %v543_v7, %v536_v47  ;;  %v899_v6 = vld [vmem:[%s1207_s3 + $0x18] sm:$0xff]  }
 0x1a0   :  { %838 = vmatpush3.bf16.msra.mxu0 %v899_v6 }
 0x1a1   :  { %v457_v11 = vadd.f32 %v1065_v9, %v449_v8  ;;  %839 = vmatprep.subr.bf16.mxu0 %v957_v31 }
 0x1a2   :  { %v391_v12 = vpop.permute.xlu0 %390  ;;  %v554_v13 = vpop.permute.xlu1 %553 }
 0x1a3   :  { %v396_v23 = vadd.f32 %v391_v12, %v384_v21  ;;  %v558_v9 = vadd.f32 %v554_v13, %v547_v22 }
 0x1a6   :  { %v541_v58 = vpop.permute.xlu0 %540  ;;  %v530_v14 = vpop.permute.xlu1 %529 }
 0x1a7   :  { %v535_v15 = vadd.f32 %v530_v14, %v1067_v10 }
 0x1a9   :  { %v546_v18 = vadd.f32 %v541_v58, %v535_v15  ;;  %v900_v15 = vld [vmem:[%s1207_s3 + $0x20] sm:$0xff]  }
 0x1aa   :  { %v552_v48 = vpop.permute.xlu0 %551  ;;  %v393_v19 = vpop.permute.xlu1 %392  ;;  %840 = vmatpush3.bf16.msra.mxu0 %v900_v15 }
 0x1ab   :  { %v557_v24 = vadd.f32 %v552_v48, %v546_v18  ;;  %v397_v25 = vadd.f32 %v393_v19, %v385_v20  ;;  %841 = vmatprep.subr.bf16.mxu0 %v957_v31 }
 0x1ae   :  { %v399_v26 = vpop.permute.xlu0 %398  ;;  %v460_v27 = vpop.permute.xlu1 %459 }
 0x1af   :  { %v401_v28 = vadd.f32 %v399_v26, %v396_v23  ;;  %v402_v30 = vadd.f32 %v399_v26, %v397_v25  ;;  %v559_v32 = vadd.f32 %v557_v24, %v399_v26  ;;  %v560_v33 = vadd.f32 %v558_v9, %v399_v26 }
 0x1b0   :  { %v462_v34 = vadd.f32 %v460_v27, %v457_v11  ;;  %v463_v35 = vadd.f32 %v460_v27, %v458_v1  ;;  %v614_v36 = vadd.f32 %v612_v56, %v460_v27  ;;  %v615_v39 = vadd.f32 %v613_v45, %v460_v27 }
 0x1b1   :  { %v403_v40 = vmax.f32 %v401_v28, 0.0  ;;  %v404_v41 = vmax.f32 %v402_v30, 0.0  ;;  %v561_v44 = vmax.f32 %v559_v32, 0.0  ;;  %v562_v46 = vmax.f32 %v560_v33, 0.0 }
 0x1b2   :  { %v464_v49 = vmax.f32 %v462_v34, 0.0  ;;  %v465_v50 = vmax.f32 %v463_v35, 0.0  ;;  %v616_v51 = vmax.f32 %v614_v36, 0.0  ;;  %v617_v52 = vmax.f32 %v615_v39, 0.0  ;;  %v493_v54 = vpop.permute.xlu0 %492  ;;  %v495_v55 = vpop.permute.xlu1 %494 }
 0x1b3   :  { %v406_v57 = vsel %vm405_vm4, %v403_v40, -inf  ;;  %v408_v59 = vsel %vm407_vm5, %v404_v41, -inf  ;;  %v563_v60 = vsel %vm405_vm4, %v561_v44, -inf  ;;  %v564_v61 = vsel %vm407_vm5, %v562_v46, -inf }
 0x1b4   :  { %v409_v56 = vmax.f32 %v406_v57, %v408_v59  ;;  %v565_v45 = vmax.f32 %v563_v60, %v564_v61  ;;  %v466_v62 = vsel %vm405_vm4, %v464_v49, -inf  ;;  %v468_v63 = vsel %vm467_vm6, %v465_v50, -inf }
 0x1b5   :  { %v469_v0 = vmax.f32 %v466_v62, %v468_v63  ;;  %v618_v37 = vsel %vm405_vm4, %v616_v51, -inf  ;;  %v619_v43 = vsel %vm467_vm6, %v617_v52, -inf  ;;  %v498_v13 = vadd.f32 %v493_v54, %v1067_v10 }
 0x1b6   :  { %v410_v1 = vrot.slane %v409_v56, 4  ;;  %v566_v2 = vrot.slane %v565_v45, 4  ;;  %v620_v3 = vmax.f32 %v618_v37, %v619_v43  ;;  %v322_v4 = vpop.permute.xlu0 %321  ;;  %v324_v5 = vpop.permute.xlu1 %323  ;;  %v499_v58 = vadd.f32 %v495_v55, %v1078_v17 }
 0x1b7   :  { %v470_v7 = vrot.slane %v469_v0, 4  ;;  %v327_v10 = vadd.f32 %v322_v4, %v1015_v42  ;;  %v328_v9 = vadd.f32 %v324_v5, %v1030_v53  ;;  %v901_v42 = vld [vmem:[%s1207_s3 + $0x28] sm:$0xff]  }
 0x1b8   :  { %v621_v8 = vrot.slane %v620_v3, 4  ;;  %v411_v11 = vmax.f32 %v409_v56, %v410_v1  ;;  %v567_v12 = vmax.f32 %v565_v45, %v566_v2  ;;  %842 = vmatpush3.bf16.msra.mxu0 %v901_v42 }
 0x1b9   :  { %v471_v14 = vmax.f32 %v469_v0, %v470_v7 }
 0x1ba   :  { %v504_v16 = vpop.permute.xlu0 %503  ;;  %v506_v38 = vpop.permute.xlu1 %505  ;;  %v622_v47 = vmax.f32 %v620_v3, %v621_v8  ;;  %v412_v18 = vrot.slane %v411_v11, 2  ;;  %v568_v48 = vrot.slane %v567_v12, 2 }
 0x1bb   :  { %v509_v19 = vadd.f32 %v504_v16, %v498_v13  ;;  %v510_v20 = vadd.f32 %v506_v38, %v499_v58  ;;  %v472_v21 = vrot.slane %v471_v14, 2 }
 0x1bc   :  { %v623_v17 = vrot.slane %v622_v47, 2  ;;  %v413_v22 = vmax.f32 %v411_v11, %v412_v18  ;;  %v569_v23 = vmax.f32 %v567_v12, %v568_v48  ;;  %v786_v18 = vld [vmem:[%s1208_s4] ss:$0 sm:$0xff] }
 0x1bd   :  { %v511_v24 = vadd.f32 %v1108_v29, %v509_v19  ;;  %v512_v25 = vadd.f32 %v1108_v29, %v510_v20  ;;  %v473_v26 = vmax.f32 %v471_v14, %v472_v21 }
 0x1be   :  { %v334_v27 = vpop.permute.xlu0 %333  ;;  %v336_v28 = vpop.permute.xlu1 %335  ;;  %v624_v30 = vmax.f32 %v622_v47, %v623_v17  ;;  %v414_v32 = vrot.slane %v413_v22, 1  ;;  %v570_v33 = vrot.slane %v569_v23, 1 }
 0x1bf   :  { %v513_v34 = vmax.f32 %v511_v24, 0.0  ;;  %v514_v35 = vmax.f32 %v512_v25, 0.0  ;;  %v339_v36 = vadd.f32 %v334_v27, %v327_v10  ;;  %v340_v53 = vadd.f32 %v336_v28, %v328_v9 }
 0x1c0   :  { %v625_v39 = vrot.slane %v624_v30, 1  ;;  %v415_v40 = vmax.f32 %v413_v22, %v414_v32  ;;  %v571_v41 = vmax.f32 %v569_v23, %v570_v33  ;;  %v474_v55 = vrot.slane %v473_v26, 1 }
 0x1c1   :  { %v515_v44 = vsel %vm351_vm7, %v513_v34, -inf  ;;  %v516_v46 = vsel %vm353_vm8, %v514_v35, -inf  ;;  %v347_v49 = vadd.f32 %v1108_v29, %v339_v36  ;;  %v348_v50 = vadd.f32 %v1108_v29, %v340_v53 }
 0x1c2   :  { %v517_v51 = vmax.f32 %v515_v44, %v516_v46  ;;  %v626_v52 = vmax.f32 %v624_v30, %v625_v39  ;;  %v857_v54 = vpack.i.bf16 %v415_v40, %v571_v41  ;;  %v475_v56 = vmax.f32 %v473_v26, %v474_v55 }
 0x1c3   :  { %v349_v57 = vmax.f32 %v347_v49, 0.0  ;;  %v350_v59 = vmax.f32 %v348_v50, 0.0 }
 0x1c4   :  { %632 = vrot.lane.b32.xlu1 %v626_v52, %s955_s10  ;;  %858 = vrot.lane.b32.xlu0 %v857_v54, %s954_s0  ;;  %v518_v45 = vrot.slane %v517_v51, 4 }
 0x1c5   :  { %v352_v31 = vsel %vm351_vm7, %v349_v57, -inf  ;;  %v354_v60 = vsel %vm353_vm8, %v350_v59, -inf }
 0x1c6   :  { %v355_v61 = vmax.f32 %v352_v31, %v354_v60  ;;  %v519_v62 = vmax.f32 %v517_v51, %v518_v45 }
 0x1c8   :  { %481 = vrot.lane.b32.xlu0 %v475_v56, %s955_s10  ;;  %v356_v29 = vrot.slane %v355_v61, 4  ;;  %v520_v0 = vrot.slane %v519_v62, 2 }
 0x1ca   :  { %v357_v63 = vmax.f32 %v355_v61, %v356_v29  ;;  %v521_v43 = vmax.f32 %v519_v62, %v520_v0 }
 0x1cc   :  { %v358_v37 = vrot.slane %v357_v63, 2  ;;  %v522_v2 = vrot.slane %v521_v43, 1 }
 0x1ce   :  { %v359_v1 = vmax.f32 %v357_v63, %v358_v37  ;;  %v523_v7 = vmax.f32 %v521_v43, %v522_v2 }
 0x1d0   :  { %v360_v3 = vrot.slane %v359_v1, 1 }
 0x1d2   :  { %v361_v8 = vmax.f32 %v359_v1, %v360_v3 }
 0x236   :  { %v859_v4 = vpop.permute.xlu0 %858  ;;  %v633_v11 = vpop.permute.xlu1 %632 }
 0x237   :  { %v861_v5 = vunpack.i.h.bf16 %v859_v4  ;;  %v860_v6 = vunpack.i.l.bf16 %v859_v4 }
 0x239   :  { %v635_v12 = vsel %vm351_vm7, %v523_v7, %v860_v6  ;;  %v484_v13 = vsel %vm351_vm7, %v361_v8, %v861_v5 }
 0x23a   :  { %v482_v58 = vpop.permute.xlu0 %481  ;;  %v636_v14 = vsel %vm485_vm10, %v635_v12, %v633_v11 }
 0x23b   :  { %v486_v15 = vsel %vm485_vm10, %v484_v13, %v482_v58  ;;  %v638_v16 = vrot.slane %v636_v14, 7 }
 0x23d   :  { %v641_v38 = vsel %vm640_vm11, %v486_v15, %v638_v16 }
 0x23e   :  { %v642_v47 = vpack.c.bf16 %v641_v38, %v641_v38 }
 0x240   :  { %844 = vmatmul.mubr.msk.bf16.vlgmr.msra.gmra.mrb[8].mxu0 %vm698_vm12, %v642_v47 }
 0x313   :  { %v736_v48 = vpop.f32.mrb[8].mxu0 }
 0x314   :  { %v737_v19 = vadd.f32 %v786_v18, %v736_v48  ;;  %v845_v20 = vpop.f32.mrb[9].mxu0 }
 0x315   :  { %v739_v21 = vpop.f32.mrb[10].mxu0 }
 0x316   :  { %v742_v10 = vmax.f32 %v737_v19, 0.0  ;;  %v846_v17 = vpop.f32.mrb[11].mxu0 }
 0x318   :  { %743 = vst [vmem:[#allocation5] sm:$0x3] %v742_v10 }
 0x319   :  { %935 = shalt.err (!%p932_p12)
}
 0x31a   :  { %s936_s4 = scalar_lea.hbm %s1209_s5, 32 }
 0x31b   :  { %p937_p13 = scmp.ne.s32.totalorder %s1209_s5, %s936_s4  ;;  %p940_p0 = scmp.lt.u32.totalorder %s936_s4, %s1209_s5 }
 0x31d   :  { %p942_p1 = pnand %p940_p0, %p937_p13 }
 0x31f   :  { %945 = shalt.err (!%p942_p1)
}
 0x320   :  { %753 = dma.vmem_to_hbm [thread:$0]  %s751_s27, 32, %s1209_s5, [#allocation4]  }
 0x321   :  { %948 = dma.done.wait [#allocation4], 32  }
 0x322   :  { %949 = vsyncadd [#allocation4], 4294967264 }
 0x323   :  { %757 = vsyncpa [#allocation3], 1 }
 0x324   :  { %758 = vsyncpa [#allocation4], 1 }

</bundles_post_ra>
